<compile_context>
chip_gen: v5e
topology: v5e:2x2
jax: 0.10.0
libtpu: 0.0.40
codegen_flags: <defaults>
</compile_context>

<pallas_src>
import jax
import jax.numpy as jnp
from jax.experimental import pallas as pl
from jax.experimental.pallas import tpu as pltpu


def _round_up(x, m):
    return ((x + m - 1) // m) * m


def _span_matmul_kernel(span_ref, y_ref, out_ref):
    """out[i,j] = sum_k span[i,k] @ y[k,j]; out tile is resident across the
    reduction axis (grid axis 2) and used directly as the f32 accumulator."""
    @pl.when(pl.program_id(2) == 0)
    def _():
        out_ref[...] = jnp.zeros_like(out_ref)

    out_ref[...] += jnp.dot(
        span_ref[...], y_ref[...], preferred_element_type=jnp.float32
    )


def average_span_extract(sequence_tensor, span_matrix, *, use_bf16=False):
    """Pallas equivalent of AverageSpanExtractor.forward.

    sequence_tensor: [B, S, D] float
    span_matrix:     [M_total, B*S] float
    returns:         [B, M_total // B, D] float32
    """
    B, S, D = sequence_tensor.shape
    M_total, K = span_matrix.shape
    assert K == B * S

    in_dtype = jnp.bfloat16 if use_bf16 else jnp.float32
    y = sequence_tensor.reshape(B * S, D).astype(in_dtype)
    span = span_matrix.astype(in_dtype)

    # Tile selection: lane-dense (multiples of 128 on last dims), sublane-
    # aligned (multiple of 8) M tile, reduction tile capped at 512.
    tm = 128 if M_total >= 128 else _round_up(M_total, 8)
    tn = 256 if D >= 256 else 128
    tk = min(512, _round_up(K, 128))

    Mp = _round_up(M_total, tm)
    Dp = _round_up(D, tn)
    Kp = _round_up(K, tk)

    # Zero-padding rows/cols contributes nothing to the matmul; sliced off below.
    if (Mp, Kp) != (M_total, K):
        span = jnp.pad(span, ((0, Mp - M_total), (0, Kp - K)))
    if (Kp, Dp) != (K, D):
        y = jnp.pad(y, ((0, Kp - K), (0, Dp - D)))

    grid = (Mp // tm, Dp // tn, Kp // tk)

    out = pl.pallas_call(
        _span_matmul_kernel,
        out_shape=jax.ShapeDtypeStruct((Mp, Dp), jnp.float32),
        grid_spec=pltpu.PrefetchScalarGridSpec(
            num_scalar_prefetch=0,
            grid=grid,
            in_specs=[
                pl.BlockSpec((tm, tk), lambda i, j, k: (i, k)),  # span tile
                pl.BlockSpec((tk, tn), lambda i, j, k: (k, j)),  # y tile
            ],
            out_specs=pl.BlockSpec((tm, tn), lambda i, j, k: (i, j)),
        ),
        compiler_params=pltpu.CompilerParams(
            dimension_semantics=("parallel", "parallel", "arbitrary"),
        ),
    )(span, y)

    out = out[:M_total, :D]
    return out.reshape(B, M_total // B, D)


def span_extractor_forward(inputs, token2mention, span_indices=None):
    """SpanExtractor.forward with config = {'avg': True} (only extractor1 active)."""
    mentions = [average_span_extract(inputs, token2mention)]
    # torch.cat(mentions, -1) with a single element is identity.
    return jnp.concatenate(mentions, axis=-1)


def _build_token2mention(B, S, M, span_len):
    """Deterministic averaging matrix: mention m in batch b averages tokens
    [m*span_len, (m+1)*span_len) of that batch in the flattened [B*S] index."""
    mat = jnp.zeros((B * M, B * S), dtype=jnp.float32)
    for b in range(B):
        for m in range(M):
            row = b * M + m
            start = b * S + m * span_len
            mat = mat.at[row, start:start + span_len].set(1.0 / span_len)
    return mat


if __name__ == "__main__":
    B, S, D = 2, 64, 128          # batch, seq, hidden
    M, span_len = 8, 4            # mentions per batch, tokens averaged per mention

    key = jax.random.PRNGKey(0)
    inputs = jax.random.normal(key, (B, S, D), dtype=jnp.float32)
    token2mention = _build_token2mention(B, S, M, span_len)  # [B*M, B*S]
    span_indices = None  # unused by the 'avg'-only configuration

    out = span_extractor_forward(inputs, token2mention, span_indices)
    out = jax.block_until_ready(out)

    # sanity check against plain-JAX reference
    ref = (token2mention @ inputs.reshape(B * S, D)).reshape(B, M, D)
    assert out.shape == (B, M, D)
    assert jnp.allclose(out, ref, atol=1e-5, rtol=1e-5)

    print("KERNEL_OK")
</pallas_src>

<mosaic_0001>
module attributes {stable_mosaic.version = 11 : i64} {
  func.func @_span_matmul_kernel(%arg0: i32, %arg1: i32, %arg2: i32, %arg3: memref<16x128xf32, #tpu.memory_space<vmem>>, %arg4: memref<128x128xf32, #tpu.memory_space<vmem>>, %arg5: memref<16x128xf32, #tpu.memory_space<vmem>>) attributes {dimension_semantics = [#tpu.dimension_semantics<parallel>, #tpu.dimension_semantics<parallel>, #tpu.dimension_semantics<arbitrary>], iteration_bounds = array<i64: 1, 1, 1>, scalar_prefetch = 0 : i64, scratch_operands = 0 : i64, tpu.core_type = #tpu.core_type<tc>, window_params = [{transform_indices = @transform_0, window_bounds = array<i64: 16, 128>}, {transform_indices = @transform_1, window_bounds = array<i64: 128, 128>}, {transform_indices = @transform_2, window_bounds = array<i64: 16, 128>}]} {
    %c0_i32 = arith.constant 0 : i32
    %0 = arith.cmpi eq, %arg2, %c0_i32 : i32
    %1 = arith.extui %0 : i1 to i32
    %c0_i32_0 = arith.constant 0 : i32
    %2 = arith.cmpi ne, %1, %c0_i32_0 : i32
    scf.if %2 {
      %cst_8 = arith.constant 0.000000e+00 : f32
      %9 = vector.broadcast %cst_8 : f32 to vector<16x128xf32>
      %c0_9 = arith.constant 0 : index
      %c0_10 = arith.constant 0 : index
      %10 = vector.load %arg5[%c0_9, %c0_10] : memref<16x128xf32, #tpu.memory_space<vmem>>, vector<16x128xf32>
      tpu.vector_store %arg5[%c0_9, %c0_10], %9 {strides = array<i32>} : memref<16x128xf32, #tpu.memory_space<vmem>>, vector<16x128xf32>,
    } else {
    }
    %c0 = arith.constant 0 : index
    %c0_1 = arith.constant 0 : index
    %3 = vector.load %arg5[%c0, %c0_1] : memref<16x128xf32, #tpu.memory_space<vmem>>, vector<16x128xf32>
    %c0_2 = arith.constant 0 : index
    %c0_3 = arith.constant 0 : index
    %4 = vector.load %arg3[%c0_2, %c0_3] : memref<16x128xf32, #tpu.memory_space<vmem>>, vector<16x128xf32>
    %c0_4 = arith.constant 0 : index
    %c0_5 = arith.constant 0 : index
    %5 = vector.load %arg4[%c0_4, %c0_5] : memref<128x128xf32, #tpu.memory_space<vmem>>, vector<128x128xf32>
    %cst = arith.constant dense<0.000000e+00> : vector<16x128xf32>
    %6 = tpu.matmul %4, %5, %cst {dimension_numbers = #tpu.dot_dimension_numbers<[1], [0], [0], [1], [0, 0, 1, 1], [], []>} : vector<16x128xf32>, vector<128x128xf32>, vector<16x128xf32> -> vector<16x128xf32>
    %7 = arith.addf %3, %6 : vector<16x128xf32>
    %c0_6 = arith.constant 0 : index
    %c0_7 = arith.constant 0 : index
    %8 = vector.load %arg5[%c0_6, %c0_7] : memref<16x128xf32, #tpu.memory_space<vmem>>, vector<16x128xf32>
    tpu.vector_store %arg5[%c0_6, %c0_7], %7 {strides = array<i32>} : memref<16x128xf32, #tpu.memory_space<vmem>>, vector<16x128xf32>,
    return
  }
  func.func @transform_0(%arg0: i32, %arg1: i32, %arg2: i32) -> (i32, i32) {
    %c0_i32 = arith.constant 0 : i32
    return %arg0, %arg2 : i32, i32
  }
  func.func @transform_1(%arg0: i32, %arg1: i32, %arg2: i32) -> (i32, i32) {
    %c0_i32 = arith.constant 0 : i32
    return %arg2, %arg1 : i32, i32
  }
  func.func @transform_2(%arg0: i32, %arg1: i32, %arg2: i32) -> (i32, i32) {
    %c0_i32 = arith.constant 0 : i32
    return %arg0, %arg1 : i32, i32
  }
}

</mosaic_0001>

<bundles_post_ra>
// kernel: tpu_custom_call.1
= control target key start
LH: loop header
LB: loop body
LE: loop exit
PB: predicated region body
PF: predicated region fallthrough
CT: control target
= control target key end

     0   :  { %7 = vsyncpa [#allocation3], 0  ;;  %s255_s0 = inlined_call_operand.hbm [shape: f32[16,128], index: 0, kind: input, shape index: {}]   ;;  %s256_s1 = inlined_call_operand.hbm [shape: f32[128,128], index: 1, kind: input, shape index: {}]   ;;  %s257_s2 = inlined_call_operand.hbm [shape: f32[16,128], index: 2, kind: output, shape index: {}]  }
   0x1   :  { %8 = vsyncpa [#allocation6], 0 }
   0x2   :  { %9 = vsyncpa [#allocation4], 0  ;;  %s14_s11 = sshll.u32 %s255_s0, 4  ;;  %s217_s12 = smov [#allocation2]   ;;  %s15_s11 = int_to_ptr.hbm [resolvable:$true] %s14_s11 }
   0x3   :  { %s16_s13 = sshll.u32 %s217_s12, 4  ;;  %s27_s16 = sshll.u32 %s256_s1, 4  ;;  %s17_s13 = int_to_ptr.vmem [resolvable:$true] %s16_s13  ;;  %s28_s16 = int_to_ptr.hbm [resolvable:$true] %s27_s16 }
   0x4   :  { %s218_s17 = smov 128   ;;  %s219_s18 = smov 8  }
   0x5   :  { %22 = dma.hbm_to_vmem [thread:$0]  %s15_s11, 256, %s17_s13, [#allocation3], %s218_s17, %s218_s17, %s219_s18  }
   0x6   :  { %s220_s19 = smov [#allocation5]  }
   0x7   :  { %s29_s20 = sshll.u32 %s220_s19, 4  ;;  %s30_s20 = int_to_ptr.vmem [resolvable:$true] %s29_s20 }
   0x8   :  { %35 = dma.hbm_to_vmem [thread:$0]  %s28_s16, 2048, %s30_s20, [#allocation6], %s218_s17, %s218_s17, %s219_s18  }
   0x9   :  { %211 = dma.done.wait [#allocation3], 256  }
   0xa   :  { %212 = vsyncadd [#allocation3], 4294967040 }
   0xb   :  { %213 = dma.done.wait [#allocation6], 2048  }
   0xc   :  { %214 = vsyncadd [#allocation6], 4294965248  ;;  %v69_v0 = vld [vmem:[#allocation5 + $0x78] sm:$0xff]  ;;  %v68_v1 = vld [vmem:[#allocation5 + $0x70] sm:$0xff]  ;;  %s221_s0 = smov [#allocation7]   ;;  %s103_s23 = sshll.u32 %s257_s2, 4  ;;  %s104_s23 = int_to_ptr.hbm [resolvable:$true] %s103_s23 }
   0xd   :  { %70 = vmatpush.msra.mxu0 %v69_v0  ;;  %117 = vmatpush.msra.mxu1 %v69_v0  ;;  %v67_v2 = vld [vmem:[#allocation5 + $0x68] sm:$0xff]  ;;  %v66_v3 = vld [vmem:[#allocation5 + $0x60] sm:$0xff]  ;;  %v65_v4 = vld [vmem:[#allocation5 + $0x58] sm:$0xff]  ;;  %s101_s1 = sshll.u32 %s221_s0, 4  ;;  %s102_s1 = int_to_ptr.vmem [resolvable:$true] %s101_s1 }
   0xe   :  { %v64_v5 = vld [vmem:[#allocation5 + $0x50] sm:$0xff]  ;;  %v63_v6 = vld [vmem:[#allocation5 + $0x48] sm:$0xff]  ;;  %v62_v7 = vld [vmem:[#allocation5 + $0x40] sm:$0xff] }
   0xf   :  { %71 = vmatpush.msra.mxu0 %v68_v1  ;;  %118 = vmatpush.msra.mxu1 %v68_v1  ;;  %v61_v8 = vld [vmem:[#allocation5 + $0x38] sm:$0xff]  ;;  %v60_v9 = vld [vmem:[#allocation5 + $0x30] sm:$0xff]  ;;  %v59_v10 = vld [vmem:[#allocation5 + $0x28] sm:$0xff] }
  0x10   :  { %v58_v11 = vld [vmem:[#allocation5 + $0x20] sm:$0xff]  ;;  %v57_v12 = vld [vmem:[#allocation5 + $0x18] sm:$0xff]  ;;  %v56_v13 = vld [vmem:[#allocation5 + $0x10] sm:$0xff] }
  0x11   :  { %72 = vmatpush.msra.mxu0 %v67_v2  ;;  %119 = vmatpush.msra.mxu1 %v67_v2  ;;  %v55_v14 = vld [vmem:[#allocation5 + $0x8] sm:$0xff]  ;;  %v54_v15 = vld [vmem:[#allocation5] sm:$0xff]  ;;  %v52_v16 = vld [vmem:[#allocation2] sm:$0xff] }
  0x12   :  { %v53_v17 = vld [vmem:[#allocation2 + $0x8] sm:$0xff] }
  0x13   :  { %73 = vmatpush.msra.mxu0 %v66_v3  ;;  %120 = vmatpush.msra.mxu1 %v66_v3 }
  0x15   :  { %74 = vmatpush.msra.mxu0 %v65_v4  ;;  %121 = vmatpush.msra.mxu1 %v65_v4 }
  0x17   :  { %75 = vmatpush.msra.mxu0 %v64_v5  ;;  %122 = vmatpush.msra.mxu1 %v64_v5 }
  0x19   :  { %76 = vmatpush.msra.mxu0 %v63_v6  ;;  %123 = vmatpush.msra.mxu1 %v63_v6 }
  0x1b   :  { %77 = vmatpush.msra.mxu0 %v62_v7  ;;  %124 = vmatpush.msra.mxu1 %v62_v7 }
  0x1d   :  { %78 = vmatpush.msra.mxu0 %v61_v8  ;;  %125 = vmatpush.msra.mxu1 %v61_v8 }
  0x1f   :  { %79 = vmatpush.msra.mxu0 %v60_v9  ;;  %126 = vmatpush.msra.mxu1 %v60_v9 }
  0x21   :  { %80 = vmatpush.msra.mxu0 %v59_v10  ;;  %127 = vmatpush.msra.mxu1 %v59_v10 }
  0x23   :  { %81 = vmatpush.msra.mxu0 %v58_v11  ;;  %128 = vmatpush.msra.mxu1 %v58_v11 }
  0x25   :  { %82 = vmatpush.msra.mxu0 %v57_v12  ;;  %129 = vmatpush.msra.mxu1 %v57_v12 }
  0x27   :  { %83 = vmatpush.msra.mxu0 %v56_v13  ;;  %130 = vmatpush.msra.mxu1 %v56_v13 }
  0x29   :  { %84 = vmatpush.msra.mxu0 %v55_v14  ;;  %131 = vmatpush.msra.mxu1 %v55_v14 }
  0x2b   :  { %85 = vmatpush.msra.mxu0 %v54_v15  ;;  %132 = vmatpush.msra.mxu1 %v54_v15 }
  0x2c   :  { %86 = vmatmul.f32.vlgmr.msra.gmra.mxu0 %v52_v16  ;;  %89 = vmatmul.f32.vlgmr.msra.gmra.mxu1 %v53_v17 }
  0xa9   :  { %v87_v18 = vpop.f32.mrf.mxu0  ;;  %v90_v19 = vpop.f32.mrf.mxu1 }
  0xaa   :  { %95 = vst [vmem:[#allocation7] sm:$0xff] %v87_v18 }
  0xab   :  { %96 = vst [vmem:[#allocation7 + $0x8] sm:$0xff] %v90_v19 }
  0xac   :  { %109 = dma.vmem_to_hbm [thread:$0]  %s102_s1, 256, %s104_s23, [#allocation4], %s218_s17, %s218_s17, %s219_s18  }
  0xad   :  { %215 = dma.done.wait [#allocation4], 256  }
  0xae   :  { %216 = vsyncadd [#allocation4], 4294967040 }
  0xaf   :  { %114 = vsyncpa [#allocation3], 1 }
  0xb0   :  { %115 = vsyncpa [#allocation6], 1 }
  0xb1   :  { %116 = vsyncpa [#allocation4], 1 }

</bundles_post_ra>
